<compile_context>
chip_gen: v6e
topology: v6e:2x2x1
jax: 0.10.0
libtpu: 0.0.40
codegen_flags: <defaults>
</compile_context>

<pallas_src>
import math

import jax
import jax.numpy as jnp
from jax import lax
from jax.experimental import pallas as pl
from jax.experimental.pallas import tpu as pltpu

HID_DIM = 32
N_HEADS = 4
HEAD_DIM = HID_DIM // N_HEADS
SCALE_INV = 1.0 / math.sqrt(HEAD_DIM)
MASK_FILL = -1e10  # matches torch masked_fill(mask == 0, -1e10)


def _make_mha_kernel(Bb, Sq, Skv, causal, return_attention, compute_dtype):
    """One grid step = `Bb` batch elements; 2-D activation rows are ordered (batch, seq)."""
    H = HID_DIM
    G = Bb * N_HEADS          # merged (batch, head) group axis for the attention einsums
    cd = compute_dtype

    def kernel(len_ref, q_ref, k_ref, v_ref, wqkv_ref, bqkv_ref, wo_ref, bo_ref,
               out_ref, *rest):

        def project(x_ref, idx):
            # Dense 2-D projection: (Bb*s, H) @ (H, H); MXU operands in compute dtype,
            # f32 accumulation, bias added in f32.
            x = x_ref[...].astype(cd)
            w = wqkv_ref[idx].astype(cd)
            return jnp.dot(x, w, preferred_element_type=jnp.float32) + bqkv_ref[idx]

        def group_heads(y, s):
            # (Bb*s, H) -> (G, s, head_dim), group index g = b*N_HEADS + h.
            # TODO(synk): replace slice+stack with pltpu.einshape once verified.
            blocks = [y[b * s:(b + 1) * s, h * HEAD_DIM:(h + 1) * HEAD_DIM]
                      for b in range(Bb) for h in range(N_HEADS)]
            return jnp.stack(blocks, axis=0)

        Qg = group_heads(project(q_ref, 0), Sq)      # (G, Sq, hd)  f32
        Kg = group_heads(project(k_ref, 1), Skv)     # (G, Skv, hd) f32
        Vg = group_heads(project(v_ref, 2), Skv)     # (G, Skv, hd) f32

        # energy = Q K^T / sqrt(hd): batched over (batch, head) groups, f32 accumulate.
        energy = jnp.einsum('gqd,gkd->gqk', Qg.astype(cd), Kg.astype(cd),
                            preferred_element_type=jnp.float32) * SCALE_INV

        # Rebuild the Seq2Seq mask in-kernel from per-batch valid-key lengths (suffix
        # padding) and the optional causal part; no (B, S, S) f32 mask is read from HBM.
        base = pl.program_id(0) * Bb
        g_idx = lax.broadcasted_iota(jnp.int32, (G, Sq, Skv), 0)
        k_idx = lax.broadcasted_iota(jnp.int32, (G, Sq, Skv), 2)
        lens_g = jnp.full((G, Sq, Skv), Skv, dtype=jnp.int32)
        for b in range(Bb):                                    # Bb is small and static
            in_b = (g_idx >= b * N_HEADS) & (g_idx < (b + 1) * N_HEADS)
            lens_g = jnp.where(in_b, len_ref[base + b], lens_g)
        keep = k_idx < lens_g
        if causal:
            q_idx = lax.broadcasted_iota(jnp.int32, (G, Sq, Skv), 1)
            keep = keep & (q_idx >= k_idx)
        energy = jnp.where(keep, energy, MASK_FILL)            # masked_fill(mask == 0, -1e10)

        # Numerically stable softmax over keys, all in f32, exact reciprocal.
        m = jnp.max(energy, axis=-1, keepdims=True)
        e = jnp.exp(energy - m)
        attn = e / jnp.sum(e, axis=-1, keepdims=True)          # (G, Sq, Skv) f32

        if return_attention:
            rest[0][...] = attn.reshape(Bb, N_HEADS, Sq, Skv).astype(rest[0].dtype)

        # dropout(attention) is identity in eval mode.
        ctx = jnp.einsum('gqk,gkd->gqd', attn.astype(cd), Vg.astype(cd),
                         preferred_element_type=jnp.float32)   # (G, Sq, hd) f32

        # Merge heads back onto lanes (inverse of group_heads) and do ONE dense 2-D output
        # projection matmul — no (n_heads, S, H) intermediate, no major-axis reduce.
        xo = jnp.concatenate(
            [jnp.concatenate([ctx[b * N_HEADS + h] for h in range(N_HEADS)], axis=-1)
             for b in range(Bb)], axis=0)                      # (Bb*Sq, H), lanes = (h, d)
        out = jnp.dot(xo.astype(cd), wo_ref[...].astype(cd),
                      preferred_element_type=jnp.float32) + bo_ref[0]
        out_ref[...] = out.astype(out_ref.dtype)               # lane/sublane-dense 2-D store

    return kernel


def multi_head_attention(query, key, value, params, *, lengths=None, causal=False,
                         return_attention=False, compute_dtype=jnp.bfloat16,
                         attn_dtype=jnp.float32, batch_block=None):
    """Masked multi-head attention (Seq2Seq core), eval mode.

    query: [B, Sq, H]; key/value: [B, Skv, H] (f32).
    lengths: [B] int32 count of valid key positions (suffix padding); None = all valid.
    causal: additionally apply the lower-triangular trg mask (requires Sq == Skv).
    TODO(synk): non-suffix padding needs a per-key bool/int8 mask input instead of lengths.
    """
    B, Sq, H = query.shape
    Bk, Skv, Hk = key.shape
    assert H == HID_DIM and Hk == HID_DIM and Bk == B
    assert value.shape == (B, Skv, H)
    if causal:
        assert Sq == Skv

    if batch_block is None:
        # One grid step over the whole batch: best on single-TC v5e/v6e at small B.
        # TODO(synk): on v7x use batch_block = B // 2 so both TensorCores get a step.
        batch_block = B
    assert B % batch_block == 0
    Bb = batch_block
    grid = (B // Bb,)

    lengths = (jnp.full((B,), Skv, jnp.int32) if lengths is None
               else jnp.asarray(lengths, jnp.int32))

    # Wrapper-side packing: O(H^2) parameters + free activation reshapes (no HBM copies
    # of activations, unlike the previous q/k/v row concatenation).
    q2 = query.reshape(B * Sq, H)
    k2 = key.reshape(B * Skv, H)
    v2 = value.reshape(B * Skv, H)
    wqkv = jnp.stack([params["wq_t"], params["wk_t"], params["wv_t"]], axis=0)   # (3, H, H)
    bqkv = jnp.concatenate([params["bq"], params["bk"], params["bv"]], axis=0)   # (3, H)
    wo_t = params["wo_t"]                                                        # (H, H)
    bo = params["bo"]                                                            # (1, H)

    # TODO(synk): at production H, single-buffer the constant weight specs
    # (pipeline_mode=pl.Buffered(1)) and/or ship them pre-cast to bf16 (v7x: 64 MiB VMEM).
    in_specs = [
        pl.BlockSpec((Bb * Sq, H), lambda g, lens: (g, 0)),     # query rows (b, s)
        pl.BlockSpec((Bb * Skv, H), lambda g, lens: (g, 0)),    # key rows
        pl.BlockSpec((Bb * Skv, H), lambda g, lens: (g, 0)),    # value rows
        pl.BlockSpec((3, H, H), lambda g, lens: (0, 0, 0)),     # Wq / Wk / Wv
        pl.BlockSpec((3, H), lambda g, lens: (0, 0)),           # bq / bk / bv
        pl.BlockSpec((H, H), lambda g, lens: (0, 0)),           # Wo
        pl.BlockSpec((1, H), lambda g, lens: (0, 0)),           # bo
    ]
    out_spec_x = pl.BlockSpec((Bb * Sq, H), lambda g, lens: (g, 0))
    if return_attention:
        out_shape = (jax.ShapeDtypeStruct((B * Sq, H), jnp.float32),
                     jax.ShapeDtypeStruct((B, N_HEADS, Sq, Skv), attn_dtype))
        out_specs = [out_spec_x,
                     pl.BlockSpec((Bb, N_HEADS, Sq, Skv), lambda g, lens: (g, 0, 0, 0))]
    else:
        out_shape = jax.ShapeDtypeStruct((B * Sq, H), jnp.float32)
        out_specs = out_spec_x

    # TODO(synk): at production S tile flash-style (online-softmax scratch, kv axis
    # "arbitrary") and set vmem_limit_bytes; the whole (G, S, S) energy/attention buffer
    # overflows v7x's 64 MiB VMEM around S ~ 2k.
    result = pl.pallas_call(
        _make_mha_kernel(Bb, Sq, Skv, causal, return_attention, compute_dtype),
        out_shape=out_shape,
        grid_spec=pltpu.PrefetchScalarGridSpec(
            num_scalar_prefetch=1,
            grid=grid,
            in_specs=in_specs,
            out_specs=out_specs,
        ),
        compiler_params=pltpu.CompilerParams(dimension_semantics=("parallel",)),
    )(lengths, q2, k2, v2, wqkv, bqkv, wo_t, bo)

    if return_attention:
        out2, attn = result
        return out2.reshape(B, Sq, H), attn
    return result.reshape(B, Sq, H)


def mha_reference(query, key, value, params, mask=None):
    """Pure-JAX mirror of the PyTorch MultiHeadAttentionLayer forward (eval mode)."""
    B, S, H = query.shape
    Q = query @ params["wq_t"] + params["bq"]
    K = key @ params["wk_t"] + params["bk"]
    V = value @ params["wv_t"] + params["bv"]

    def split(x):
        return x.reshape(B, -1, N_HEADS, HEAD_DIM).transpose(0, 2, 1, 3)

    Qh, Kh, Vh = split(Q), split(K), split(V)
    energy = jnp.einsum('bhqd,bhkd->bhqk', Qh, Kh) * SCALE_INV
    if mask is not None:
        energy = jnp.where(mask[:, None, :, :] != 0.0, energy, MASK_FILL)
    attn = jax.nn.softmax(energy, axis=-1)
    ctx = jnp.einsum('bhqk,bhkd->bhqd', attn, Vh)
    x = ctx.transpose(0, 2, 1, 3).reshape(B, S, H)
    out = x @ params["wo_t"] + params["bo"]
    return out, attn


def init_params(key, hid_dim):
    """Deterministic synthetic parameters. Weights stored pre-transposed as [in, out]."""
    ks = jax.random.split(key, 8)
    scale = 1.0 / math.sqrt(hid_dim)

    def w(k):
        # PyTorch Linear weight is (out, in); generate (out, in) then transpose to (in, out).
        return jax.random.uniform(k, (hid_dim, hid_dim), jnp.float32, -scale, scale).T

    def b(k):
        return jax.random.uniform(k, (1, hid_dim), jnp.float32, -scale, scale)

    return {
        "wq_t": w(ks[0]), "bq": b(ks[1]),
        "wk_t": w(ks[2]), "bk": b(ks[3]),
        "wv_t": w(ks[4]), "bv": b(ks[5]),
        "wo_t": w(ks[6]), "bo": b(ks[7]),
    }


if __name__ == "__main__":
    B, S, H = 2, 8, HID_DIM
    root = jax.random.PRNGKey(0)
    k_p, k_q, k_k, k_v = jax.random.split(root, 4)

    params = init_params(k_p, H)
    query = jax.random.normal(k_q, (B, S, H), jnp.float32)
    key_in = jax.random.normal(k_k, (B, S, H), jnp.float32)
    value = jax.random.normal(k_v, (B, S, H), jnp.float32)

    # Seq2Seq trg-mask scenario: suffix padding (valid key counts) & causal mask.
    lengths = jnp.array([S, S - 2], jnp.int32)

    # Reference mask with torch semantics: (trg != pad) key mask & lower-triangular mask.
    pos = jnp.arange(S)
    pad_mask = (pos[None, :] < lengths[:, None]).astype(jnp.float32)       # (B, S)
    causal_m = jnp.tril(jnp.ones((S, S), jnp.float32))                     # (S, S)
    mask = pad_mask[:, None, :] * causal_m[None, :, :]                     # (B, S, S)
    ref_out, ref_attn = mha_reference(query, key_in, value, params, mask=mask)

    # Primary path: bf16 MXU operands / f32 accumulate, no attention writeback.
    out_fast = multi_head_attention(query, key_in, value, params,
                                    lengths=lengths, causal=True,
                                    return_attention=False,
                                    compute_dtype=jnp.bfloat16)
    jax.block_until_ready(out_fast)
    assert out_fast.shape == (B, S, H)
    assert jnp.allclose(out_fast, ref_out, rtol=3e-2, atol=3e-2), "bf16 path mismatch"

    # Parity path: f32 MXU operands + exact-reciprocal softmax, attention weights returned.
    out_f32, attn_f32 = multi_head_attention(query, key_in, value, params,
                                             lengths=lengths, causal=True,
                                             return_attention=True,
                                             compute_dtype=jnp.float32)
    jax.block_until_ready(out_f32)
    jax.block_until_ready(attn_f32)
    assert out_f32.shape == (B, S, H) and attn_f32.shape == (B, N_HEADS, S, S)
    # Residual tolerance comes from default-precision f32 MXU matmuls on both sides
    # (hardware rounds operands toward bf16), not from the softmax (exact reciprocal now).
    assert jnp.allclose(out_f32, ref_out, rtol=1e-2, atol=1e-2), "f32 output mismatch"
    assert jnp.allclose(attn_f32, ref_attn, rtol=1e-2, atol=1e-2), "attention mismatch"

    print("KERNEL_OK")
</pallas_src>

<mosaic_0001>
module attributes {stable_mosaic.version = 11 : i64} {
  func.func @kernel(%arg0: i32, %arg1: memref<2xi32, #tpu.memory_space<smem>>, %arg2: memref<16x32xf32, #tpu.memory_space<vmem>>, %arg3: memref<16x32xf32, #tpu.memory_space<vmem>>, %arg4: memref<16x32xf32, #tpu.memory_space<vmem>>, %arg5: memref<3x32x32xf32, #tpu.memory_space<vmem>>, %arg6: memref<3x32xf32, #tpu.memory_space<vmem>>, %arg7: memref<32x32xf32, #tpu.memory_space<vmem>>, %arg8: memref<1x32xf32, #tpu.memory_space<vmem>>, %arg9: memref<16x32xf32, #tpu.memory_space<vmem>>) attributes {dimension_semantics = [#tpu.dimension_semantics<parallel>], iteration_bounds = array<i64: 1>, scalar_prefetch = 1 : i64, scratch_operands = 0 : i64, tpu.core_type = #tpu.core_type<tc>, window_params = [{transform_indices = @transform_0, window_bounds = array<i64: 16, 32>}, {transform_indices = @transform_1, window_bounds = array<i64: 16, 32>}, {transform_indices = @transform_2, window_bounds = array<i64: 16, 32>}, {pipeline_mode = #tpu.pipeline_mode<synchronous>, transform_indices = @transform_3, window_bounds = array<i64: 3, 32, 32>}, {pipeline_mode = #tpu.pipeline_mode<synchronous>, transform_indices = @transform_4, window_bounds = array<i64: 3, 32>}, {pipeline_mode = #tpu.pipeline_mode<synchronous>, transform_indices = @transform_5, window_bounds = array<i64: 32, 32>}, {pipeline_mode = #tpu.pipeline_mode<synchronous>, transform_indices = @transform_6, window_bounds = array<i64: 1, 32>}, {transform_indices = @transform_7, window_bounds = array<i64: 16, 32>}]} {
    %c0 = arith.constant 0 : index
    %c0_0 = arith.constant 0 : index
    %0 = vector.load %arg2[%c0, %c0_0] : memref<16x32xf32, #tpu.memory_space<vmem>>, vector<16x32xf32>
    %1 = arith.truncf %0 : vector<16x32xf32> to vector<16x32xbf16>
    %c0_1 = arith.constant 0 : index
    %c0_2 = arith.constant 0 : index
    %c0_3 = arith.constant 0 : index
    %2 = vector.load %arg5[%c0_1, %c0_2, %c0_3] : memref<3x32x32xf32, #tpu.memory_space<vmem>>, vector<1x32x32xf32>
    %3 = vector.shape_cast %2 : vector<1x32x32xf32> to vector<32x32xf32>
    %4 = arith.truncf %3 : vector<32x32xf32> to vector<32x32xbf16>
    %cst = arith.constant dense<0.000000e+00> : vector<16x32xf32>
    %5 = tpu.matmul %1, %4, %cst {dimension_numbers = #tpu.dot_dimension_numbers<[1], [0], [0], [1], [0, 0, 1, 1], [], []>} : vector<16x32xbf16>, vector<32x32xbf16>, vector<16x32xf32> -> vector<16x32xf32>
    %c0_4 = arith.constant 0 : index
    %c0_5 = arith.constant 0 : index
    %6 = vector.load %arg6[%c0_4, %c0_5] : memref<3x32xf32, #tpu.memory_space<vmem>>, vector<1x32xf32>
    %7 = vector.shape_cast %6 : vector<1x32xf32> to vector<32xf32>
    %8 = vector.shape_cast %7 : vector<32xf32> to vector<1x32xf32>
    %9 = vector.broadcast %8 : vector<1x32xf32> to vector<16x32xf32>
    %10 = arith.addf %5, %9 : vector<16x32xf32>
    %11 = vector.extract_strided_slice %10 {offsets = [0, 0], sizes = [8, 8], strides = [1, 1]} : vector<16x32xf32> to vector<8x8xf32>
    %12 = vector.extract_strided_slice %10 {offsets = [0, 8], sizes = [8, 8], strides = [1, 1]} : vector<16x32xf32> to vector<8x8xf32>
    %13 = vector.extract_strided_slice %10 {offsets = [0, 16], sizes = [8, 8], strides = [1, 1]} : vector<16x32xf32> to vector<8x8xf32>
    %14 = vector.extract_strided_slice %10 {offsets = [0, 24], sizes = [8, 8], strides = [1, 1]} : vector<16x32xf32> to vector<8x8xf32>
    %15 = vector.extract_strided_slice %10 {offsets = [8, 0], sizes = [8, 8], strides = [1, 1]} : vector<16x32xf32> to vector<8x8xf32>
    %16 = vector.extract_strided_slice %10 {offsets = [8, 8], sizes = [8, 8], strides = [1, 1]} : vector<16x32xf32> to vector<8x8xf32>
    %17 = vector.extract_strided_slice %10 {offsets = [8, 16], sizes = [8, 8], strides = [1, 1]} : vector<16x32xf32> to vector<8x8xf32>
    %18 = vector.extract_strided_slice %10 {offsets = [8, 24], sizes = [8, 8], strides = [1, 1]} : vector<16x32xf32> to vector<8x8xf32>
    %19 = vector.shape_cast %11 : vector<8x8xf32> to vector<1x8x8xf32>
    %20 = vector.shape_cast %12 : vector<8x8xf32> to vector<1x8x8xf32>
    %21 = vector.shape_cast %13 : vector<8x8xf32> to vector<1x8x8xf32>
    %22 = vector.shape_cast %14 : vector<8x8xf32> to vector<1x8x8xf32>
    %23 = vector.shape_cast %15 : vector<8x8xf32> to vector<1x8x8xf32>
    %24 = vector.shape_cast %16 : vector<8x8xf32> to vector<1x8x8xf32>
    %25 = vector.shape_cast %17 : vector<8x8xf32> to vector<1x8x8xf32>
    %26 = vector.shape_cast %18 : vector<8x8xf32> to vector<1x8x8xf32>
    %27 = tpu.concatenate %19, %20, %21, %22, %23, %24, %25, %26 in 0 : vector<1x8x8xf32>, vector<1x8x8xf32>, vector<1x8x8xf32>, vector<1x8x8xf32>, vector<1x8x8xf32>, vector<1x8x8xf32>, vector<1x8x8xf32>, vector<1x8x8xf32> -> vector<8x8x8xf32>
    %c0_6 = arith.constant 0 : index
    %c0_7 = arith.constant 0 : index
    %28 = vector.load %arg3[%c0_6, %c0_7] : memref<16x32xf32, #tpu.memory_space<vmem>>, vector<16x32xf32>
    %29 = arith.truncf %28 : vector<16x32xf32> to vector<16x32xbf16>
    %c1 = arith.constant 1 : index
    %c0_8 = arith.constant 0 : index
    %c0_9 = arith.constant 0 : index
    %30 = vector.load %arg5[%c1, %c0_8, %c0_9] : memref<3x32x32xf32, #tpu.memory_space<vmem>>, vector<1x32x32xf32>
    %31 = vector.shape_cast %30 : vector<1x32x32xf32> to vector<32x32xf32>
    %32 = arith.truncf %31 : vector<32x32xf32> to vector<32x32xbf16>
    %cst_10 = arith.constant dense<0.000000e+00> : vector<16x32xf32>
    %33 = tpu.matmul %29, %32, %cst_10 {dimension_numbers = #tpu.dot_dimension_numbers<[1], [0], [0], [1], [0, 0, 1, 1], [], []>} : vector<16x32xbf16>, vector<32x32xbf16>, vector<16x32xf32> -> vector<16x32xf32>
    %c1_11 = arith.constant 1 : index
    %c0_12 = arith.constant 0 : index
    %34 = vector.load %arg6[%c1_11, %c0_12] : memref<3x32xf32, #tpu.memory_space<vmem>>, vector<1x32xf32>
    %35 = vector.shape_cast %34 : vector<1x32xf32> to vector<32xf32>
    %36 = vector.shape_cast %35 : vector<32xf32> to vector<1x32xf32>
    %37 = vector.broadcast %36 : vector<1x32xf32> to vector<16x32xf32>
    %38 = arith.addf %33, %37 : vector<16x32xf32>
    %39 = vector.extract_strided_slice %38 {offsets = [0, 0], sizes = [8, 8], strides = [1, 1]} : vector<16x32xf32> to vector<8x8xf32>
    %40 = vector.extract_strided_slice %38 {offsets = [0, 8], sizes = [8, 8], strides = [1, 1]} : vector<16x32xf32> to vector<8x8xf32>
    %41 = vector.extract_strided_slice %38 {offsets = [0, 16], sizes = [8, 8], strides = [1, 1]} : vector<16x32xf32> to vector<8x8xf32>
    %42 = vector.extract_strided_slice %38 {offsets = [0, 24], sizes = [8, 8], strides = [1, 1]} : vector<16x32xf32> to vector<8x8xf32>
    %43 = vector.extract_strided_slice %38 {offsets = [8, 0], sizes = [8, 8], strides = [1, 1]} : vector<16x32xf32> to vector<8x8xf32>
    %44 = vector.extract_strided_slice %38 {offsets = [8, 8], sizes = [8, 8], strides = [1, 1]} : vector<16x32xf32> to vector<8x8xf32>
    %45 = vector.extract_strided_slice %38 {offsets = [8, 16], sizes = [8, 8], strides = [1, 1]} : vector<16x32xf32> to vector<8x8xf32>
    %46 = vector.extract_strided_slice %38 {offsets = [8, 24], sizes = [8, 8], strides = [1, 1]} : vector<16x32xf32> to vector<8x8xf32>
    %47 = vector.shape_cast %39 : vector<8x8xf32> to vector<1x8x8xf32>
    %48 = vector.shape_cast %40 : vector<8x8xf32> to vector<1x8x8xf32>
    %49 = vector.shape_cast %41 : vector<8x8xf32> to vector<1x8x8xf32>
    %50 = vector.shape_cast %42 : vector<8x8xf32> to vector<1x8x8xf32>
    %51 = vector.shape_cast %43 : vector<8x8xf32> to vector<1x8x8xf32>
    %52 = vector.shape_cast %44 : vector<8x8xf32> to vector<1x8x8xf32>
    %53 = vector.shape_cast %45 : vector<8x8xf32> to vector<1x8x8xf32>
    %54 = vector.shape_cast %46 : vector<8x8xf32> to vector<1x8x8xf32>
    %55 = tpu.concatenate %47, %48, %49, %50, %51, %52, %53, %54 in 0 : vector<1x8x8xf32>, vector<1x8x8xf32>, vector<1x8x8xf32>, vector<1x8x8xf32>, vector<1x8x8xf32>, vector<1x8x8xf32>, vector<1x8x8xf32>, vector<1x8x8xf32> -> vector<8x8x8xf32>
    %c0_13 = arith.constant 0 : index
    %c0_14 = arith.constant 0 : index
    %56 = vector.load %arg4[%c0_13, %c0_14] : memref<16x32xf32, #tpu.memory_space<vmem>>, vector<16x32xf32>
    %57 = arith.truncf %56 : vector<16x32xf32> to vector<16x32xbf16>
    %c2 = arith.constant 2 : index
    %c0_15 = arith.constant 0 : index
    %c0_16 = arith.constant 0 : index
    %58 = vector.load %arg5[%c2, %c0_15, %c0_16] : memref<3x32x32xf32, #tpu.memory_space<vmem>>, vector<1x32x32xf32>
    %59 = vector.shape_cast %58 : vector<1x32x32xf32> to vector<32x32xf32>
    %60 = arith.truncf %59 : vector<32x32xf32> to vector<32x32xbf16>
    %cst_17 = arith.constant dense<0.000000e+00> : vector<16x32xf32>
    %61 = tpu.matmul %57, %60, %cst_17 {dimension_numbers = #tpu.dot_dimension_numbers<[1], [0], [0], [1], [0, 0, 1, 1], [], []>} : vector<16x32xbf16>, vector<32x32xbf16>, vector<16x32xf32> -> vector<16x32xf32>
    %c2_18 = arith.constant 2 : index
    %c0_19 = arith.constant 0 : index
    %62 = vector.load %arg6[%c2_18, %c0_19] : memref<3x32xf32, #tpu.memory_space<vmem>>, vector<1x32xf32>
    %63 = vector.shape_cast %62 : vector<1x32xf32> to vector<32xf32>
    %64 = vector.shape_cast %63 : vector<32xf32> to vector<1x32xf32>
    %65 = vector.broadcast %64 : vector<1x32xf32> to vector<16x32xf32>
    %66 = arith.addf %61, %65 : vector<16x32xf32>
    %67 = vector.extract_strided_slice %66 {offsets = [0, 0], sizes = [8, 8], strides = [1, 1]} : vector<16x32xf32> to vector<8x8xf32>
    %68 = vector.extract_strided_slice %66 {offsets = [0, 8], sizes = [8, 8], strides = [1, 1]} : vector<16x32xf32> to vector<8x8xf32>
    %69 = vector.extract_strided_slice %66 {offsets = [0, 16], sizes = [8, 8], strides = [1, 1]} : vector<16x32xf32> to vector<8x8xf32>
    %70 = vector.extract_strided_slice %66 {offsets = [0, 24], sizes = [8, 8], strides = [1, 1]} : vector<16x32xf32> to vector<8x8xf32>
    %71 = vector.extract_strided_slice %66 {offsets = [8, 0], sizes = [8, 8], strides = [1, 1]} : vector<16x32xf32> to vector<8x8xf32>
    %72 = vector.extract_strided_slice %66 {offsets = [8, 8], sizes = [8, 8], strides = [1, 1]} : vector<16x32xf32> to vector<8x8xf32>
    %73 = vector.extract_strided_slice %66 {offsets = [8, 16], sizes = [8, 8], strides = [1, 1]} : vector<16x32xf32> to vector<8x8xf32>
    %74 = vector.extract_strided_slice %66 {offsets = [8, 24], sizes = [8, 8], strides = [1, 1]} : vector<16x32xf32> to vector<8x8xf32>
    %75 = vector.shape_cast %67 : vector<8x8xf32> to vector<1x8x8xf32>
    %76 = vector.shape_cast %68 : vector<8x8xf32> to vector<1x8x8xf32>
    %77 = vector.shape_cast %69 : vector<8x8xf32> to vector<1x8x8xf32>
    %78 = vector.shape_cast %70 : vector<8x8xf32> to vector<1x8x8xf32>
    %79 = vector.shape_cast %71 : vector<8x8xf32> to vector<1x8x8xf32>
    %80 = vector.shape_cast %72 : vector<8x8xf32> to vector<1x8x8xf32>
    %81 = vector.shape_cast %73 : vector<8x8xf32> to vector<1x8x8xf32>
    %82 = vector.shape_cast %74 : vector<8x8xf32> to vector<1x8x8xf32>
    %83 = tpu.concatenate %75, %76, %77, %78, %79, %80, %81, %82 in 0 : vector<1x8x8xf32>, vector<1x8x8xf32>, vector<1x8x8xf32>, vector<1x8x8xf32>, vector<1x8x8xf32>, vector<1x8x8xf32>, vector<1x8x8xf32>, vector<1x8x8xf32> -> vector<8x8x8xf32>
    %84 = arith.truncf %27 : vector<8x8x8xf32> to vector<8x8x8xbf16>
    %85 = arith.truncf %55 : vector<8x8x8xf32> to vector<8x8x8xbf16>
    "tpu.trace_start"() <{level = 10 : i32, message = "gqd,gkd->gqk"}> : () -> ()
    %cst_20 = arith.constant dense<0.000000e+00> : vector<8x8x8xf32>
    %86 = tpu.matmul %84, %85, %cst_20 {dimension_numbers = #tpu.dot_dimension_numbers<[2], [2], [1], [1], [0, 0, 0, 1, 1, 1], [0], [0]>} : vector<8x8x8xbf16>, vector<8x8x8xbf16>, vector<8x8x8xf32> -> vector<8x8x8xf32>
    "tpu.trace_stop"() : () -> ()
    %cst_21 = arith.constant 0.353553385 : f32
    %87 = vector.broadcast %cst_21 : f32 to vector<8x8x8xf32>
    %88 = arith.mulf %86, %87 : vector<8x8x8xf32>
    %c2_i32 = arith.constant 2 : i32
    %89 = arith.muli %arg0, %c2_i32 : i32
    %90 = tpu.iota {dimensions = array<i32: 0>} : vector<8x8x8xi32>
    %91 = tpu.iota {dimensions = array<i32: 2>} : vector<8x8x8xi32>
    %c8_i32 = arith.constant 8 : i32
    %92 = vector.broadcast %c8_i32 : i32 to vector<8x8x8xi32>
    %c0_i32 = arith.constant 0 : i32
    %93 = vector.broadcast %c0_i32 : i32 to vector<8x8x8xi32>
    %94 = arith.cmpi sge, %90, %93 : vector<8x8x8xi32>
    %c4_i32 = arith.constant 4 : i32
    %95 = vector.broadcast %c4_i32 : i32 to vector<8x8x8xi32>
    %96 = arith.cmpi slt, %90, %95 : vector<8x8x8xi32>
    %97 = arith.andi %94, %96 : vector<8x8x8xi1>
    %c0_i32_22 = arith.constant 0 : i32
    %98 = arith.addi %89, %c0_i32_22 : i32
    %99 = arith.index_cast %98 : i32 to index
    %100 = memref.load %arg1[%99] : memref<2xi32, #tpu.memory_space<smem>>
    %101 = vector.broadcast %100 : i32 to vector<8x8x8xi32>
    %102 = arith.select %97, %101, %92 : vector<8x8x8xi1>, vector<8x8x8xi32>
    %c4_i32_23 = arith.constant 4 : i32
    %103 = vector.broadcast %c4_i32_23 : i32 to vector<8x8x8xi32>
    %104 = arith.cmpi sge, %90, %103 : vector<8x8x8xi32>
    %c8_i32_24 = arith.constant 8 : i32
    %105 = vector.broadcast %c8_i32_24 : i32 to vector<8x8x8xi32>
    %106 = arith.cmpi slt, %90, %105 : vector<8x8x8xi32>
    %107 = arith.andi %104, %106 : vector<8x8x8xi1>
    %c1_i32 = arith.constant 1 : i32
    %108 = arith.addi %89, %c1_i32 : i32
    %109 = arith.index_cast %108 : i32 to index
    %110 = memref.load %arg1[%109] : memref<2xi32, #tpu.memory_space<smem>>
    %111 = vector.broadcast %110 : i32 to vector<8x8x8xi32>
    %112 = arith.select %107, %111, %102 : vector<8x8x8xi1>, vector<8x8x8xi32>
    %113 = arith.cmpi slt, %91, %112 : vector<8x8x8xi32>
    %114 = tpu.iota {dimensions = array<i32: 1>} : vector<8x8x8xi32>
    %115 = arith.cmpi sge, %114, %91 : vector<8x8x8xi32>
    %116 = arith.andi %113, %115 : vector<8x8x8xi1>
    %cst_25 = arith.constant -1.000000e+10 : f32
    %117 = vector.broadcast %cst_25 : f32 to vector<8x8x8xf32>
    %118 = arith.select %116, %88, %117 : vector<8x8x8xi1>, vector<8x8x8xf32>
    %cst_26 = arith.constant dense<0xFF800000> : vector<8x8xf32>
    %119 = vector.multi_reduction <maximumf>, %118, %cst_26 [2] : vector<8x8x8xf32> to vector<8x8xf32>
    %120 = vector.shape_cast %119 : vector<8x8xf32> to vector<8x8x1xf32>
    %121 = vector.broadcast %120 : vector<8x8x1xf32> to vector<8x8x8xf32>
    %122 = arith.subf %118, %121 : vector<8x8x8xf32>
    %123 = math.exp %122 : vector<8x8x8xf32>
    %cst_27 = arith.constant dense<0.000000e+00> : vector<8x8xf32>
    %124 = vector.multi_reduction <add>, %123, %cst_27 [2] : vector<8x8x8xf32> to vector<8x8xf32>
    %125 = vector.shape_cast %124 : vector<8x8xf32> to vector<8x8x1xf32>
    %126 = vector.broadcast %125 : vector<8x8x1xf32> to vector<8x8x8xf32>
    %127 = arith.divf %123, %126 : vector<8x8x8xf32>
    %128 = arith.truncf %127 : vector<8x8x8xf32> to vector<8x8x8xbf16>
    %129 = arith.truncf %83 : vector<8x8x8xf32> to vector<8x8x8xbf16>
    "tpu.trace_start"() <{level = 10 : i32, message = "gqk,gkd->gqd"}> : () -> ()
    %cst_28 = arith.constant dense<0.000000e+00> : vector<8x8x8xf32>
    %130 = tpu.matmul %128, %129, %cst_28 {dimension_numbers = #tpu.dot_dimension_numbers<[2], [1], [1], [2], [0, 0, 0, 1, 1, 2], [0], [0]>} : vector<8x8x8xbf16>, vector<8x8x8xbf16>, vector<8x8x8xf32> -> vector<8x8x8xf32>
    "tpu.trace_stop"() : () -> ()
    %131 = vector.extract_strided_slice %130 {offsets = [0, 0, 0], sizes = [1, 8, 8], strides = [1, 1, 1]} : vector<8x8x8xf32> to vector<1x8x8xf32>
    %132 = vector.shape_cast %131 : vector<1x8x8xf32> to vector<8x8xf32>
    %133 = vector.extract_strided_slice %130 {offsets = [1, 0, 0], sizes = [1, 8, 8], strides = [1, 1, 1]} : vector<8x8x8xf32> to vector<1x8x8xf32>
    %134 = vector.shape_cast %133 : vector<1x8x8xf32> to vector<8x8xf32>
    %135 = vector.extract_strided_slice %130 {offsets = [2, 0, 0], sizes = [1, 8, 8], strides = [1, 1, 1]} : vector<8x8x8xf32> to vector<1x8x8xf32>
    %136 = vector.shape_cast %135 : vector<1x8x8xf32> to vector<8x8xf32>
    %137 = vector.extract_strided_slice %130 {offsets = [3, 0, 0], sizes = [1, 8, 8], strides = [1, 1, 1]} : vector<8x8x8xf32> to vector<1x8x8xf32>
    %138 = vector.shape_cast %137 : vector<1x8x8xf32> to vector<8x8xf32>
    %139 = tpu.concatenate %132, %134, %136, %138 in 1 : vector<8x8xf32>, vector<8x8xf32>, vector<8x8xf32>, vector<8x8xf32> -> vector<8x32xf32>
    %140 = vector.extract_strided_slice %130 {offsets = [4, 0, 0], sizes = [1, 8, 8], strides = [1, 1, 1]} : vector<8x8x8xf32> to vector<1x8x8xf32>
    %141 = vector.shape_cast %140 : vector<1x8x8xf32> to vector<8x8xf32>
    %142 = vector.extract_strided_slice %130 {offsets = [5, 0, 0], sizes = [1, 8, 8], strides = [1, 1, 1]} : vector<8x8x8xf32> to vector<1x8x8xf32>
    %143 = vector.shape_cast %142 : vector<1x8x8xf32> to vector<8x8xf32>
    %144 = vector.extract_strided_slice %130 {offsets = [6, 0, 0], sizes = [1, 8, 8], strides = [1, 1, 1]} : vector<8x8x8xf32> to vector<1x8x8xf32>
    %145 = vector.shape_cast %144 : vector<1x8x8xf32> to vector<8x8xf32>
    %146 = vector.extract_strided_slice %130 {offsets = [7, 0, 0], sizes = [1, 8, 8], strides = [1, 1, 1]} : vector<8x8x8xf32> to vector<1x8x8xf32>
    %147 = vector.shape_cast %146 : vector<1x8x8xf32> to vector<8x8xf32>
    %148 = tpu.concatenate %141, %143, %145, %147 in 1 : vector<8x8xf32>, vector<8x8xf32>, vector<8x8xf32>, vector<8x8xf32> -> vector<8x32xf32>
    %149 = tpu.concatenate %139, %148 in 0 : vector<8x32xf32>, vector<8x32xf32> -> vector<16x32xf32>
    %150 = arith.truncf %149 : vector<16x32xf32> to vector<16x32xbf16>
    %c0_29 = arith.constant 0 : index
    %c0_30 = arith.constant 0 : index
    %151 = vector.load %arg7[%c0_29, %c0_30] : memref<32x32xf32, #tpu.memory_space<vmem>>, vector<32x32xf32>
    %152 = arith.truncf %151 : vector<32x32xf32> to vector<32x32xbf16>
    %cst_31 = arith.constant dense<0.000000e+00> : vector<16x32xf32>
    %153 = tpu.matmul %150, %152, %cst_31 {dimension_numbers = #tpu.dot_dimension_numbers<[1], [0], [0], [1], [0, 0, 1, 1], [], []>} : vector<16x32xbf16>, vector<32x32xbf16>, vector<16x32xf32> -> vector<16x32xf32>
    %c0_32 = arith.constant 0 : index
    %c0_33 = arith.constant 0 : index
    %154 = vector.load %arg8[%c0_32, %c0_33] : memref<1x32xf32, #tpu.memory_space<vmem>>, vector<1x32xf32>
    %155 = vector.shape_cast %154 : vector<1x32xf32> to vector<32xf32>
    %156 = vector.shape_cast %155 : vector<32xf32> to vector<1x32xf32>
    %157 = vector.broadcast %156 : vector<1x32xf32> to vector<16x32xf32>
    %158 = arith.addf %153, %157 : vector<16x32xf32>
    %c0_34 = arith.constant 0 : index
    %c0_35 = arith.constant 0 : index
    %159 = vector.load %arg9[%c0_34, %c0_35] : memref<16x32xf32, #tpu.memory_space<vmem>>, vector<16x32xf32>
    tpu.vector_store %arg9[%c0_34, %c0_35], %158 {strides = array<i32>} : memref<16x32xf32, #tpu.memory_space<vmem>>, vector<16x32xf32>,
    return
  }
  func.func @transform_0(%arg0: i32, %arg1: memref<2xi32, #tpu.memory_space<smem>>) -> (i32, i32) {
    %c0_i32 = arith.constant 0 : i32
    %c0_i32_0 = arith.constant 0 : i32
    return %arg0, %c0_i32 : i32, i32
  }
  func.func @transform_1(%arg0: i32, %arg1: memref<2xi32, #tpu.memory_space<smem>>) -> (i32, i32) {
    %c0_i32 = arith.constant 0 : i32
    %c0_i32_0 = arith.constant 0 : i32
    return %arg0, %c0_i32 : i32, i32
  }
  func.func @transform_2(%arg0: i32, %arg1: memref<2xi32, #tpu.memory_space<smem>>) -> (i32, i32) {
    %c0_i32 = arith.constant 0 : i32
    %c0_i32_0 = arith.constant 0 : i32
    return %arg0, %c0_i32 : i32, i32
  }
  func.func @transform_3(%arg0: i32, %arg1: memref<2xi32, #tpu.memory_space<smem>>) -> (i32, i32, i32) {
    %c0_i32 = arith.constant 0 : i32
    %c0_i32_0 = arith.constant 0 : i32
    %c0_i32_1 = arith.constant 0 : i32
    %c0_i32_2 = arith.constant 0 : i32
    return %c0_i32, %c0_i32_0, %c0_i32_1 : i32, i32, i32
  }
  func.func @transform_4(%arg0: i32, %arg1: memref<2xi32, #tpu.memory_space<smem>>) -> (i32, i32) {
    %c0_i32 = arith.constant 0 : i32
    %c0_i32_0 = arith.constant 0 : i32
    %c0_i32_1 = arith.constant 0 : i32
    return %c0_i32, %c0_i32_0 : i32, i32
  }
  func.func @transform_5(%arg0: i32, %arg1: memref<2xi32, #tpu.memory_space<smem>>) -> (i32, i32) {
    %c0_i32 = arith.constant 0 : i32
    %c0_i32_0 = arith.constant 0 : i32
    %c0_i32_1 = arith.constant 0 : i32
    return %c0_i32, %c0_i32_0 : i32, i32
  }
  func.func @transform_6(%arg0: i32, %arg1: memref<2xi32, #tpu.memory_space<smem>>) -> (i32, i32) {
    %c0_i32 = arith.constant 0 : i32
    %c0_i32_0 = arith.constant 0 : i32
    %c0_i32_1 = arith.constant 0 : i32
    return %c0_i32, %c0_i32_0 : i32, i32
  }
  func.func @transform_7(%arg0: i32, %arg1: memref<2xi32, #tpu.memory_space<smem>>) -> (i32, i32) {
    %c0_i32 = arith.constant 0 : i32
    %c0_i32_0 = arith.constant 0 : i32
    return %arg0, %c0_i32 : i32, i32
  }
}

</mosaic_0001>

<bundles_post_ra>
// kernel: tpu_custom_call.1
= control target key start
LH: loop header
LB: loop body
LE: loop exit
PB: predicated region body
PF: predicated region fallthrough
CT: control target
= control target key end

     0   :  { %s1736_s27 = smov [#allocation3]   ;;  %s2075_s0 = inlined_call_operand.hbm [shape: s32[2], index: 0, kind: input, shape index: {}]   ;;  %s2076_s1 = inlined_call_operand.hbm [shape: f32[16,32], index: 1, kind: input, shape index: {}]   ;;  %s2077_s2 = inlined_call_operand.hbm [shape: f32[16,32], index: 2, kind: input, shape index: {}]   ;;  %s2078_s3 = inlined_call_operand.hbm [shape: f32[16,32], index: 3, kind: input, shape index: {}]   ;;  %s2079_s4 = inlined_call_operand.hbm [shape: f32[3,32,32], index: 4, kind: input, shape index: {}]   ;;  %s2080_s5 = inlined_call_operand.vmem [shape: f32[3,32], index: 5, kind: input, shape index: {}]   ;;  %s2081_s6 = inlined_call_operand.hbm [shape: f32[32,32], index: 6, kind: input, shape index: {}]   ;;  %s2082_s7 = inlined_call_operand.vmem [shape: f32[1,32], index: 7, kind: input, shape index: {}]   ;;  %s2083_s8 = inlined_call_operand.hbm [shape: f32[16,32], index: 8, kind: output, shape index: {}]  }
   0x1   :  { %14 = dma.hbm_to_smem %s2075_s0, 16, %s1736_s27, [#allocation2] }
   0x2   :  { %1726 = dma.done.wait [#allocation2], 16 }
   0x3   :  { %1727 = vsyncadd [#allocation2], 4294967280 }
   0x4   :  { %16 = sfence }
   0x5   :  { %17 = vsyncpa [#allocation5], 0 }
   0x6   :  { %18 = vsyncpa [#allocation8], 0 }
   0x7   :  { %19 = vsyncpa [#allocation11], 0 }
   0x8   :  { %20 = vsyncpa [#allocation6], 0  ;;  %s1737_s30 = smov [#allocation7]   ;;  %s1738_s10 = smov [#allocation10]  }
   0x9   :  { %s38_s9 = sshll.u32 %s1737_s30, 4  ;;  %s62_s11 = sshll.u32 %s1738_s10, 4  ;;  %s39_s9 = int_to_ptr.vmem [resolvable:$true] %s38_s9  ;;  %s63_s11 = int_to_ptr.vmem [resolvable:$true] %s62_s11 }
   0xa   :  { %s1614_s12 = scalar_lea.vmem %s39_s9, 256  ;;  %p1619_p1 = scmp.lt.s32.totalorder %s39_s9, %s39_s9 }
   0xb   :  { %p1615_p0 = scmp.ne.s32.totalorder %s39_s9, %s1614_s12  ;;  %p1620_p2 = scmp.lt.s32.totalorder %s1614_s12, %s1614_s12 }
   0xd   :  { %p1621_p3 = por %p1620_p2, %p1619_p1 }
   0xf   :  { %p1622_p4 = pnand %p1621_p3, %p1615_p0 }
  0x11   :  { %1625 = shalt.err (!%p1622_p4)
}
  0x12   :  { %s1739_s0 = smov 128   ;;  %s1740_s13 = smov 8  }
  0x13   :  { %44 = dma.hbm_to_vmem [thread:$0]  %s2077_s2, 256, %s39_s9, [#allocation8], %s1739_s0, %s1739_s0, %s1740_s13  }
  0x14   :  { %s1634_s16 = scalar_lea.vmem %s63_s11, 1536  ;;  %p1639_p6 = scmp.lt.s32.totalorder %s63_s11, %s63_s11 }
  0x15   :  { %p1635_p5 = scmp.ne.s32.totalorder %s63_s11, %s1634_s16  ;;  %p1640_p7 = scmp.lt.s32.totalorder %s1634_s16, %s1634_s16 }
  0x17   :  { %p1641_p8 = por %p1640_p7, %p1639_p6 }
  0x19   :  { %p1642_p9 = pnand %p1641_p8, %p1635_p5 }
  0x1b   :  { %1645 = shalt.err (!%p1642_p9)
}
  0x1c   :  { %68 = dma.hbm_to_vmem [thread:$0]  %s2079_s4, 1536, %s63_s11, [#allocation11], %s1739_s0, %s1739_s0, %s1740_s13  }
  0x1d   :  { %s1741_s19 = smov [#allocation4]   ;;  %s1742_s21 = smov [#allocation9]  }
  0x1e   :  { %s26_s20 = sshll.u32 %s1741_s19, 4  ;;  %s50_s22 = sshll.u32 %s1742_s21, 4  ;;  %s27_s20 = int_to_ptr.vmem [resolvable:$true] %s26_s20  ;;  %s51_s22 = int_to_ptr.vmem [resolvable:$true] %s50_s22 }
  0x1f   :  { %s1654_s2 = scalar_lea.vmem %s27_s20, 256  ;;  %p1659_p11 = scmp.lt.s32.totalorder %s27_s20, %s27_s20 }
  0x20   :  { %p1655_p10 = scmp.ne.s32.totalorder %s27_s20, %s1654_s2  ;;  %p1660_p12 = scmp.lt.s32.totalorder %s1654_s2, %s1654_s2 }
  0x22   :  { %p1661_p13 = por %p1660_p12, %p1659_p11 }
  0x24   :  { %p1662_p0 = pnand %p1661_p13, %p1655_p10 }
  0x26   :  { %1665 = shalt.err (!%p1662_p0)
}
  0x27   :  { %32 = dma.hbm_to_vmem [thread:$0]  %s2076_s1, 256, %s27_s20, [#allocation5], %s1739_s0, %s1739_s0, %s1740_s13  }
  0x28   :  { %s1674_s4 = scalar_lea.vmem %s51_s22, 256  ;;  %p1679_p2 = scmp.lt.s32.totalorder %s51_s22, %s51_s22 }
  0x29   :  { %p1675_p1 = scmp.ne.s32.totalorder %s51_s22, %s1674_s4  ;;  %p1680_p3 = scmp.lt.s32.totalorder %s1674_s4, %s1674_s4 }
  0x2b   :  { %p1681_p4 = por %p1680_p3, %p1679_p2 }
  0x2d   :  { %p1682_p5 = pnand %p1681_p4, %p1675_p1 }
  0x2f   :  { %1685 = shalt.err (!%p1682_p5)
}
  0x30   :  { %56 = dma.hbm_to_vmem [thread:$0]  %s2078_s3, 256, %s51_s22, [#allocation8], %s1739_s0, %s1739_s0, %s1740_s13  }
  0x31   :  { %s1743_s27 = smov [#allocation12]  }
  0x32   :  { %s76_s28 = sshll.u32 %s1743_s27, 4  ;;  %s77_s28 = int_to_ptr.vmem [resolvable:$true] %s76_s28 }
  0x33   :  { %s1694_s29 = scalar_lea.vmem %s77_s28, 512  ;;  %p1699_p7 = scmp.lt.s32.totalorder %s77_s28, %s77_s28 }
  0x34   :  { %p1695_p6 = scmp.ne.s32.totalorder %s77_s28, %s1694_s29  ;;  %p1700_p8 = scmp.lt.s32.totalorder %s1694_s29, %s1694_s29 }
  0x36   :  { %p1701_p9 = por %p1700_p8, %p1699_p7 }
  0x38   :  { %p1702_p10 = pnand %p1701_p9, %p1695_p6 }
  0x3a   :  { %1705 = shalt.err (!%p1702_p10)
}
  0x3b   :  { %82 = dma.hbm_to_vmem [thread:$0]  %s2081_s6, 512, %s77_s28, [#allocation11], %s1739_s0, %s1739_s0, %s1740_s13  }
  0x3c   :  { %1728 = dma.done.wait [#allocation5], 256  }
  0x3d   :  { %1729 = vsyncadd [#allocation5], 4294967040 }
  0x3e   :  { %1730 = dma.done.wait [#allocation8], 512  }
  0x3f   :  { %1731 = vsyncadd [#allocation8], 4294966784 }
  0x40   :  { %1732 = dma.done.wait [#allocation11], 2048  }
  0x41   :  { %1733 = vsyncadd [#allocation11], 4294965248  ;;  %v1744_v0 = vmov 0.0   ;;  %vm1745_vm0 = vmmov 0   ;;  %v106_v1 = vld [vmem:[#allocation10 + $0x10] sm:$0xff]  ;;  %v107_v2 = vld [vmem:[#allocation10 + $0x18] sm:$0xff] }
  0x42   :  { %1407 = vmatprep.subr.bf16.mxu0 %v1744_v0  ;;  %1415 = vmatprep.subr.bf16.mxu1 %v1744_v0  ;;  %v186_v3 = vld [vmem:[#allocation10 + $0x30] sm:$0xff]  ;;  %v109_v4 = vpack.c.bf16 %v107_v2, %v106_v1  ;;  %v187_v5 = vld [vmem:[#allocation10 + $0x38] sm:$0xff]  ;;  %v104_v6 = vld [vmem:[#allocation10] sm:$0xff]  ;;  %vm115_vm1 = vcmask 261120   ;;  %s1746_s11 = smov 120   ;;  %vm354_vm2 = vcmask 64512  }
  0x43   :  { %1411 = vmatprep.mubr.msk.bf16.mxu0 %vm1745_vm0, %v1744_v0  ;;  %1419 = vmatprep.mubr.msk.bf16.mxu1 %vm1745_vm0, %v1744_v0  ;;  %v105_v7 = vld [vmem:[#allocation10 + $0x8] sm:$0xff]  ;;  %v189_v8 = vpack.c.bf16 %v187_v5, %v186_v3  ;;  %v184_v9 = vld [vmem:[#allocation10 + $0x20] sm:$0xff]  ;;  %v101_v12 = vld [vmem:[#allocation4] sm:$0xff]  ;;  %s1747_s12 = smov 104   ;;  %s1748_s14 = smov 112   ;;  %vm861_vm3 = vcmask 1043456  }
  0x44   :  { %v185_v10 = vld [vmem:[#allocation10 + $0x28] sm:$0xff]  ;;  %1408 = vmatpush3.bf16.msra.mxu0 %v109_v4  ;;  %v108_v11 = vpack.c.bf16 %v105_v7, %v104_v6  ;;  %v102_v13 = vld [vmem:[#allocation4 + $0x8] sm:$0xff]  ;;  %v180_v15 = vld [vmem:[#allocation7] sm:$0xff]  ;;  %s1352_s17 = sld [smem:[#allocation3 + $0x1]]  ;;  %s1749_s18 = smov 16   ;;  %vm1240_vm9 = vcmask 130048  }
  0x45   :  { %1416 = vmatpush3.bf16.msra.mxu1 %v189_v8  ;;  %1409 = vmatprep.subr.bf16.mxu0 %v1744_v0  ;;  %v188_v14 = vpack.c.bf16 %v185_v10, %v184_v9  ;;  %v181_v16 = vld [vmem:[#allocation7 + $0x8] sm:$0xff]  ;;  %v103_v17 = vpack.c.bf16 %v102_v13, %v101_v12  ;;  %v265_v19 = vld [vmem:[#allocation10 + $0x50] sm:$0xff]  ;;  %v266_v20 = vld [vmem:[#allocation10 + $0x58] sm:$0xff]  ;;  %s1750_s19 = smov 24   ;;  %vm1242_vm10 = vcmask 195584   ;;  %s1751_s22 = smov [#allocation13]  }
  0x46   :  { %1417 = vmatprep.subr.bf16.mxu1 %v1744_v0  ;;  %v182_v18 = vpack.c.bf16 %v181_v16, %v180_v15  ;;  %v263_v21 = vld [vmem:[#allocation10 + $0x40] sm:$0xff]  ;;  %v268_v22 = vpack.c.bf16 %v266_v20, %v265_v19  ;;  %v264_v23 = vld [vmem:[#allocation10 + $0x48] sm:$0xff]  ;;  %v259_v25 = vld [vmem:[#allocation9] sm:$0xff]  ;;  %s1324_s2 = sshll.u32 %s1751_s22, 4  ;;  %s1325_s2 = int_to_ptr.vmem [resolvable:$true] %s1324_s2 }
  0x47   :  { %v267_v24 = vpack.c.bf16 %v264_v23, %v263_v21  ;;  %v260_v26 = vld [vmem:[#allocation9 + $0x8] sm:$0xff]  ;;  %v1338_v28 = vld [vmem:[%s2080_s5] ss:$0 sm:$0xff]  ;;  %v1340_v29 = vld [vmem:[%s2080_s5 + $0x1] ss:$0 sm:$0xff]  ;;  %s1706_s23 = scalar_lea.vmem %s1325_s2, 256  ;;  %p1711_p12 = scmp.lt.s32.totalorder %s1325_s2, %s1325_s2 }
  0x48   :  { %1410 = vmatpush3.bf16.msra.mxu0 %v108_v11  ;;  %v261_v27 = vpack.c.bf16 %v260_v26, %v259_v25  ;;  %v1342_v46 = vld [vmem:[%s2080_s5 + $0x2] ss:$0 sm:$0xff]  ;;  %s734_s5 = sld [smem:[#allocation3]]  ;;  %p1707_p11 = scmp.ne.s32.totalorder %s1325_s2, %s1706_s23 }
  0x49   :  { %1418 = vmatpush3.bf16.msra.mxu1 %v188_v14  ;;  %1423 = vmatprep.subr.bf16.mxu0 %v1744_v0  ;;  %p1712_p13 = scmp.lt.s32.totalorder %s1706_s23, %s1706_s23 }
  0x4a   :  { %1431 = vmatprep.subr.bf16.mxu1 %v1744_v0 }
  0x4b   :  { %1412 = vmatmul.mubr.msk.bf16.vlgmr.msra.gmra.mxu0 %vm115_vm1, %v103_v17  ;;  %p1713_p0 = por %p1712_p13, %p1711_p12 }
  0x4c   :  { %1420 = vmatmul.mubr.msk.bf16.vlgmr.msra.gmra.mxu1 %vm115_vm1, %v182_v18  ;;  %1427 = vmatprep.mubr.msk.bf16.mxu0 %vm1745_vm0, %v1744_v0 }
  0x4d   :  { %1433 = vmatprep.mubr.msk.bf16.mxu1 %vm1745_vm0, %v1744_v0  ;;  %1424 = vmatpush3.bf16.msra.mxu0 %v268_v22  ;;  %p1714_p1 = pnand %p1713_p0, %p1707_p11 }
  0x4e   :  { %1425 = vmatprep.subr.bf16.mxu0 %v1744_v0 }
  0x51   :  { %1426 = vmatpush3.bf16.msra.mxu0 %v267_v24  ;;  %v732_v24 = vlaneseq }
  0x52   :  { %1437 = vmatprep.subr.bf16.mxu0 %v1744_v0 }
  0x53   :  { %v733_v25 = vand.u32 127, %v732_v24  ;;  %v742_v26 = vshrl.u32 %v732_v24, 7 }
  0x54   :  { %1428 = vmatmul.mubr.msk.bf16.vlgmr.msra.gmra.mxu0 %vm115_vm1, %v261_v27  ;;  %v735_v27 = vstv %s734_s5 }
  0x55   :  { %1439 = vmatprep.mubr.msk.bf16.mxu0 %vm1745_vm0, %v1744_v0  ;;  %vm739_vm4 = vcmp.lt.s32.totalorder %v733_v25, %v735_v27  ;;  %vm743_vm5 = vcmp.ge.s32.totalorder %v742_v26, %v733_v25 }
  0x56   :  { %vm1921_vm6 = vmand %vm739_vm4, %vm743_vm5 }
 0x10b   :  { %v153_v30 = vpop.f32.mrf.mxu0 }
 0x10c   :  { %v154_v31 = vadd.f32 %v1338_v28, %v153_v30  ;;  %v232_v32 = vpop.f32.mrf.mxu1 }
 0x10d   :  { %v233_v33 = vadd.f32 %v1340_v29, %v232_v32  ;;  %v1413_v34 = vpop.f32.mrf.mxu0 }
 0x10e   :  { %v1421_v35 = vpop.f32.mrf.mxu1  ;;  %161 = vrot.lane.b32.xlu1 %v154_v31, %s1746_s11  ;;  %v338_v42 = vpack.c.bf16 %v154_v31, %v154_v31 }
 0x10f   :  { %240 = vrot.lane.b32.xlu0 %v233_v33, %s1746_s11  ;;  %v156_v36 = vpop.f32.mrf.mxu0  ;;  %v346_v37 = vpack.c.bf16 %v233_v33, %v233_v33 }
 0x110   :  { %v235_v38 = vpop.f32.mrf.mxu1  ;;  %v157_v44 = vadd.f32 %v1338_v28, %v156_v36 }
 0x111   :  { %v1414_v39 = vpop.f32.mrf.mxu0  ;;  %v359_v40 = vsel %vm354_vm2, %v346_v37, 0  ;;  %v236_v43 = vadd.f32 %v1340_v29, %v235_v38 }
 0x112   :  { %v1422_v41 = vpop.f32.mrf.mxu1  ;;  %1432 = vmatpush3.bf16.xpose.msra.mxu1 %v359_v40  ;;  %246 = vrot.lane.b32.xlu1 %v233_v33, %s1747_s12  ;;  %v342_v12 = vpack.c.bf16 %v157_v44, %v157_v44 }
 0x113   :  { %243 = vrot.lane.b32.xlu0 %v233_v33, %s1748_s14  ;;  %1443 = vmatprep.subr.bf16.mxu1 %v1744_v0  ;;  %v350_v1 = vpack.c.bf16 %v236_v43, %v236_v43 }
 0x114   :  { %v311_v45 = vpop.f32.mrf.mxu0 }
 0x115   :  { %v543_v6 = vsel %vm354_vm2, %v350_v1, 0  ;;  %v1898_v13 = vadd.f32 %v1342_v46, %v311_v45 }
 0x116   :  { %167 = vrot.lane.b32.xlu1 %v154_v31, %s1747_s12  ;;  %v1429_v47 = vpop.f32.mrf.mxu0 }
 0x117   :  { %164 = vrot.lane.b32.xlu0 %v154_v31, %s1748_s14  ;;  %v850_v17 = vpack.c.bf16 %v1898_v13, %v1898_v13 }
 0x118   :  { %v314_v48 = vpop.f32.mrf.mxu0 }
 0x119   :  { %1434 = vmatmul.mubr.msk.bf16.vlgmr.msra.gmra.mxu1 %vm354_vm2, %v338_v42  ;;  %v1877_v49 = vadd.f32 %v1342_v46, %v314_v48  ;;  %v863_v21 = vsel %vm861_vm3, %v850_v17, 0  ;;  %v738_v46 = vstv %s1352_s17 }
 0x11a   :  { %253 = vrot.lane.b32.xlu1 %v236_v43, %s1748_s14  ;;  %1445 = vmatprep.mubr.msk.bf16.mxu1 %vm1745_vm0, %v1744_v0  ;;  %v1430_v50 = vpop.f32.mrf.mxu0  ;;  %vm740_vm7 = vcmp.lt.s32.totalorder %v733_v25, %v738_v46 }
 0x11b   :  { %250 = vrot.lane.b32.xlu0 %v236_v43, %s1746_s11  ;;  %vm1944_vm8 = vmand %vm740_vm7, %vm743_vm5 }
 0x11e   :  { %256 = vrot.lane.b32.xlu1 %v236_v43, %s1747_s12 }
 0x11f   :  { %171 = vrot.lane.b32.xlu0 %v157_v44, %s1746_s11 }
 0x122   :  { %177 = vrot.lane.b32.xlu1 %v157_v44, %s1747_s12 }
 0x123   :  { %174 = vrot.lane.b32.xlu0 %v157_v44, %s1748_s14 }
 0x180   :  { %v162_v51 = vpop.permute.xlu1 %161 }
 0x181   :  { %v241_v52 = vpop.permute.xlu0 %240  ;;  %v339_v62 = vpack.c.bf16 %v162_v51, %v162_v51 }
 0x182   :  { %v347_v53 = vpack.c.bf16 %v241_v52, %v241_v52 }
 0x184   :  { %v405_v54 = vsel %vm354_vm2, %v347_v53, 0  ;;  %v247_v55 = vpop.permute.xlu1 %246 }
 0x185   :  { %v244_v56 = vpop.permute.xlu0 %243  ;;  %1438 = vmatpush3.bf16.xpose.msra.mxu0 %v405_v54  ;;  %v349_v59 = vpack.c.bf16 %v247_v55, %v247_v55 }
 0x186   :  { %v348_v57 = vpack.c.bf16 %v244_v56, %v244_v56  ;;  %1449 = vmatprep.subr.bf16.mxu0 %v1744_v0 }
 0x187   :  { %v497_v63 = vsel %vm354_vm2, %v349_v59, 0 }
 0x188   :  { %v451_v58 = vsel %vm354_vm2, %v348_v57, 0  ;;  %v168_v61 = vpop.permute.xlu1 %167 }
 0x189   :  { %v165_v60 = vpop.permute.xlu0 %164  ;;  %1444 = vmatpush3.bf16.xpose.msra.mxu1 %v451_v58  ;;  %v341_v7 = vpack.c.bf16 %v168_v61, %v168_v61 }
 0x18a   :  { %1455 = vmatprep.subr.bf16.mxu1 %v1744_v0  ;;  %v340_v3 = vpack.c.bf16 %v165_v60, %v165_v60 }
 0x18c   :  { %1440 = vmatmul.mubr.msk.bf16.vlgmr.msra.gmra.mxu0 %vm354_vm2, %v339_v62  ;;  %v254_v4 = vpop.permute.xlu1 %253 }
 0x18d   :  { %v251_v2 = vpop.permute.xlu0 %250  ;;  %1450 = vmatpush3.bf16.xpose.msra.mxu0 %v497_v63  ;;  %1451 = vmatprep.mubr.msk.bf16.mxu0 %vm1745_vm0, %v1744_v0  ;;  %v352_v9 = vpack.c.bf16 %v254_v4, %v254_v4 }
 0x18e   :  { %1461 = vmatprep.subr.bf16.mxu0 %v1744_v0  ;;  %v351_v5 = vpack.c.bf16 %v251_v2, %v251_v2 }
 0x18f   :  { %v635_v14 = vsel %vm354_vm2, %v352_v9, 0 }
 0x190   :  { %1446 = vmatmul.mubr.msk.bf16.vlgmr.msra.gmra.mxu1 %vm354_vm2, %v340_v3  ;;  %v589_v8 = vsel %vm354_vm2, %v351_v5, 0  ;;  %v257_v10 = vpop.permute.xlu1 %256 }
 0x191   :  { %1456 = vmatpush3.bf16.xpose.msra.mxu1 %v543_v6  ;;  %1457 = vmatprep.mubr.msk.bf16.mxu1 %vm1745_vm0, %v1744_v0  ;;  %v172_v11 = vpop.permute.xlu0 %171  ;;  %v353_v15 = vpack.c.bf16 %v257_v10, %v257_v10 }
 0x192   :  { %1467 = vmatprep.subr.bf16.mxu1 %v1744_v0  ;;  %v343_v16 = vpack.c.bf16 %v172_v11, %v172_v11 }
 0x193   :  { %v681_v19 = vsel %vm354_vm2, %v353_v15, 0 }
 0x194   :  { %1452 = vmatmul.mubr.msk.bf16.vlgmr.msra.gmra.mxu0 %vm354_vm2, %v341_v7  ;;  %v178_v22 = vpop.permute.xlu1 %177 }
 0x195   :  { %1462 = vmatpush3.bf16.xpose.msra.mxu0 %v589_v8  ;;  %1463 = vmatprep.mubr.msk.bf16.mxu0 %vm1745_vm0, %v1744_v0  ;;  %v175_v18 = vpop.permute.xlu0 %174  ;;  %v345_v23 = vpack.c.bf16 %v178_v22, %v178_v22 }
 0x196   :  { %1473 = vmatprep.subr.bf16.mxu0 %v1744_v0  ;;  %v344_v20 = vpack.c.bf16 %v175_v18, %v175_v18 }
 0x198   :  { %1458 = vmatmul.mubr.msk.bf16.vlgmr.msra.gmra.mxu1 %vm354_vm2, %v342_v12 }
 0x199   :  { %1468 = vmatpush3.bf16.xpose.msra.mxu1 %v635_v14  ;;  %1469 = vmatprep.mubr.msk.bf16.mxu1 %vm1745_vm0, %v1744_v0 }
 0x19a   :  { %1479 = vmatprep.subr.bf16.mxu1 %v1744_v0 }
 0x19c   :  { %1464 = vmatmul.mubr.msk.bf16.vlgmr.msra.gmra.mxu0 %vm354_vm2, %v343_v16 }
 0x19d   :  { %1474 = vmatpush3.bf16.xpose.msra.mxu0 %v681_v19  ;;  %1475 = vmatprep.mubr.msk.bf16.mxu0 %vm1745_vm0, %v1744_v0 }
 0x19e   :  { %1485 = vmatprep.subr.bf16.mxu0 %v1744_v0 }
 0x1a0   :  { %1470 = vmatmul.mubr.msk.bf16.vlgmr.msra.gmra.mxu1 %vm354_vm2, %v344_v20 }
 0x1a1   :  { %1480 = vmatpush3.bf16.msra.mxu1 %v863_v21  ;;  %1481 = vmatprep.mubr.msk.bf16.mxu1 %vm1745_vm0, %v1744_v0 }
 0x1a2   :  { %1491 = vmatprep.subr.bf16.mxu1 %v1744_v0 }
 0x1a4   :  { %1476 = vmatmul.mubr.msk.bf16.vlgmr.msra.gmra.mxu0 %vm354_vm2, %v345_v23 }
 0x1a5   :  { %1487 = vmatprep.mubr.msk.bf16.mxu0 %vm1745_vm0, %v1744_v0 }
 0x1d9   :  { %v395_v28 = vpop.f32.mrf.mxu1 }
 0x1da   :  { %v723_v30 = vmul.f32 0.35355338, %v395_v28 }
 0x1db   :  { %v1435_v31 = vpop.f32.mrf.mxu1 }
 0x1dc   :  { %v1927_v32 = vsel %vm1921_vm6, %v723_v30, -1e+10 }
 0x1dd   :  { %v398_v33 = vpop.f32.mrf.mxu1  ;;  %v754_v34 = vsel %vm354_vm2, %v1927_v32, -inf }
 0x1de   :  { %755 = vmax.xlane.f32.xlu0 %v754_v34 }
 0x1df   :  { %v1436_v35 = vpop.f32.mrf.mxu1 }
 0x24c   :  { %v441_v36 = vpop.f32.mrf.mxu0 }
 0x24d   :  { %v724_v37 = vmul.f32 0.35355338, %v441_v36 }
 0x24e   :  { %v1441_v38 = vpop.f32.mrf.mxu0 }
 0x24f   :  { %v1933_v39 = vsel %vm1921_vm6, %v724_v37, -1e+10 }
 0x250   :  { %v444_v40 = vpop.f32.mrf.mxu0  ;;  %v487_v41 = vpop.f32.mrf.mxu1  ;;  %v757_v42 = vsel %vm354_vm2, %v1933_v39, -inf }
 0x251   :  { %v725_v43 = vmul.f32 0.35355338, %v487_v41  ;;  %758 = vmax.xlane.f32.xlu1 %v757_v42 }
 0x252   :  { %v1442_v44 = vpop.f32.mrf.mxu0  ;;  %v1447_v45 = vpop.f32.mrf.mxu1 }
 0x253   :  { %v748_v47 = vsel %vm1921_vm6, %v725_v43, -1e+10 }
 0x254   :  { %v490_v48 = vpop.f32.mrf.mxu1  ;;  %v533_v50 = vpop.f32.mrf.mxu0  ;;  %v760_v51 = vsel %vm354_vm2, %v748_v47, -inf }
 0x255   :  { %v726_v52 = vmul.f32 0.35355338, %v533_v50  ;;  %761 = vmax.xlane.f32.xlu0 %v760_v51 }
 0x256   :  { %v1448_v53 = vpop.f32.mrf.mxu1  ;;  %v1453_v54 = vpop.f32.mrf.mxu0 }
 0x257   :  { %v749_v55 = vsel %vm1921_vm6, %v726_v52, -1e+10 }
 0x258   :  { %v536_v56 = vpop.f32.mrf.mxu0  ;;  %v579_v57 = vpop.f32.mrf.mxu1  ;;  %v763_v58 = vsel %vm354_vm2, %v749_v55, -inf }
 0x259   :  { %v727_v60 = vmul.f32 0.35355338, %v579_v57  ;;  %764 = vmax.xlane.f32.xlu0 %v763_v58 }
 0x25a   :  { %v1454_v61 = vpop.f32.mrf.mxu0  ;;  %v1459_v62 = vpop.f32.mrf.mxu1 }
 0x25b   :  { %v1950_v63 = vsel %vm1944_vm8, %v727_v60, -1e+10 }
 0x25c   :  { %v582_v1 = vpop.f32.mrf.mxu1  ;;  %v625_v2 = vpop.f32.mrf.mxu0  ;;  %v766_v3 = vsel %vm354_vm2, %v1950_v63, -inf }
 0x25d   :  { %v728_v4 = vmul.f32 0.35355338, %v625_v2  ;;  %767 = vmax.xlane.f32.xlu1 %v766_v3 }
 0x25e   :  { %v1460_v5 = vpop.f32.mrf.mxu1  ;;  %v1465_v6 = vpop.f32.mrf.mxu0 }
 0x25f   :  { %v1956_v7 = vsel %vm1944_vm8, %v728_v4, -1e+10 }
 0x260   :  { %v628_v8 = vpop.f32.mrf.mxu0  ;;  %v671_v9 = vpop.f32.mrf.mxu1  ;;  %v769_v10 = vsel %vm354_vm2, %v1956_v7, -inf }
 0x261   :  { %v729_v11 = vmul.f32 0.35355338, %v671_v9  ;;  %770 = vmax.xlane.f32.xlu0 %v769_v10 }
 0x262   :  { %v1466_v12 = vpop.f32.mrf.mxu0  ;;  %v1471_v14 = vpop.f32.mrf.mxu1 }
 0x263   :  { %v752_v15 = vsel %vm1944_vm8, %v729_v11, -1e+10 }
 0x264   :  { %v674_v16 = vpop.f32.mrf.mxu1  ;;  %v717_v17 = vpop.f32.mrf.mxu0  ;;  %v772_v18 = vsel %vm354_vm2, %v752_v15, -inf }
 0x265   :  { %v730_v19 = vmul.f32 0.35355338, %v717_v17  ;;  %773 = vmax.xlane.f32.xlu1 %v772_v18 }
 0x266   :  { %v1472_v20 = vpop.f32.mrf.mxu1  ;;  %v1477_v21 = vpop.f32.mrf.mxu0 }
 0x267   :  { %v753_v22 = vsel %vm1944_vm8, %v730_v19, -1e+10  ;;  %v756_v26 = vpop.xlane.xlu0 %755 }
 0x268   :  { %v720_v23 = vpop.f32.mrf.mxu0  ;;  %v775_v24 = vsel %vm354_vm2, %v753_v22, -inf  ;;  %v778_v27 = vsub.f32 %v1927_v32, %v756_v26 }
 0x269   :  { %776 = vmax.xlane.f32.xlu0 %v775_v24 }
 0x26a   :  { %v1478_v25 = vpop.f32.mrf.mxu0  ;;  %v786_v28 = vmul.f32 1.442695, %v778_v27 }
 0x26b   :  { %v854_v25 = vpack.c.bf16 %v1877_v49, %v1877_v49 }
 0x26c   :  { %1566 = vpow2.f32 %v786_v28 }
 0x276   :  { %322 = vrot.lane.b32.xlu1 %v1898_v13, %s1748_s14 }
 0x279   :  { %v1971_v29 = vpop.eup %1566 }
 0x27a   :  { %v802_v30 = vsel %vm354_vm2, %v1971_v29, 0.0 }
 0x27f   :  { %319 = vrot.lane.b32.xlu0 %v1898_v13, %s1746_s11 }
 0x29a   :  { %803 = vadd.xlane.f32.xlu1 %v802_v30  ;;  %v1047_v30 = vsel %vm861_vm3, %v854_v25, 0 }
 0x2da   :  { %v759_v31 = vpop.xlane.xlu1 %758 }
 0x2db   :  { %v779_v33 = vsub.f32 %v1933_v39, %v759_v31 }
 0x2dd   :  { %v788_v34 = vmul.f32 1.442695, %v779_v33 }
 0x2de   :  { %v762_v35 = vpop.xlane.xlu0 %761 }
 0x2df   :  { %1568 = vpow2.f32 %v788_v34  ;;  %v780_v36 = vsub.f32 %v748_v47, %v762_v35 }
 0x2e1   :  { %v790_v37 = vmul.f32 1.442695, %v780_v36 }
 0x2e2   :  { %v765_v38 = vpop.xlane.xlu0 %764 }
 0x2e3   :  { %1570 = vpow2.f32 %v790_v37  ;;  %v781_v40 = vsub.f32 %v749_v55, %v765_v38 }
 0x2e5   :  { %v792_v32 = vmul.f32 1.442695, %v781_v40 }
 0x2e6   :  { %v768_v52 = vpop.xlane.xlu1 %767 }
 0x2e7   :  { %1572 = vpow2.f32 %v792_v32  ;;  %v782_v53 = vsub.f32 %v1950_v63, %v768_v52 }
 0x2e9   :  { %v794_v56 = vmul.f32 1.442695, %v782_v53 }
 0x2ea   :  { %v771_v43 = vpop.xlane.xlu0 %770 }
 0x2eb   :  { %v783_v55 = vsub.f32 %v1956_v7, %v771_v43  ;;  %1574 = vpow2.f32 %v794_v56 }
 0x2ec   :  { %v1976_v41 = vpop.eup %1568 }
 0x2ed   :  { %v805_v42 = vsel %vm354_vm2, %v1976_v41, 0.0  ;;  %v796_v58 = vmul.f32 1.442695, %v783_v55 }
 0x2ee   :  { %806 = vadd.xlane.f32.xlu0 %v805_v42  ;;  %v774_v54 = vpop.xlane.xlu1 %773 }
 0x2ef   :  { %v784_v57 = vsub.f32 %v752_v15, %v774_v54  ;;  %1576 = vpow2.f32 %v796_v58 }
 0x2f0   :  { %v1980_v44 = vpop.eup %1570 }
 0x2f1   :  { %v808_v39 = vsel %vm354_vm2, %v1980_v44, 0.0  ;;  %v798_v59 = vmul.f32 1.442695, %v784_v57 }
 0x2f2   :  { %809 = vadd.xlane.f32.xlu1 %v808_v39  ;;  %v777_v45 = vpop.xlane.xlu0 %776  ;;  %v323_v62 = vpop.permute.xlu1 %322 }
 0x2f3   :  { %v785_v60 = vsub.f32 %v753_v22, %v777_v45  ;;  %1578 = vpow2.f32 %v798_v59  ;;  %v852_v9 = vpack.c.bf16 %v323_v62, %v323_v62 }
 0x2f4   :  { %v1984_v46 = vpop.eup %1572 }
 0x2f5   :  { %v811_v47 = vsel %vm354_vm2, %v1984_v46, 0.0  ;;  %v800_v61 = vmul.f32 1.442695, %v785_v60  ;;  %v955_v12 = vsel %vm861_vm3, %v852_v9, 0  ;;  %v1263_v9 = vld [vmem:[#allocation12 + $0x18] sm:$0xff] }
 0x2f6   :  { %812 = vadd.xlane.f32.xlu0 %v811_v47  ;;  %v320_v48 = vpop.permute.xlu0 %319 }
 0x2f7   :  { %v851_v50 = vpack.c.bf16 %v320_v48, %v320_v48  ;;  %1580 = vpow2.f32 %v800_v61 }
 0x2f8   :  { %v1996_v1 = vpop.eup %1574 }
 0x2f9   :  { %v909_v51 = vsel %vm861_vm3, %v851_v50, 0  ;;  %v814_v63 = vsel %vm354_vm2, %v1996_v1, 0.0 }
 0x2fa   :  { %1486 = vmatpush3.bf16.msra.mxu0 %v909_v51 }
 0x2fb   :  { %1497 = vmatprep.subr.bf16.mxu0 %v1744_v0 }
 0x303   :  { %329 = vrot.lane.b32.xlu1 %v1877_v49, %s1746_s11 }
 0x30c   :  { %325 = vrot.lane.b32.xlu0 %v1898_v13, %s1747_s12  ;;  %v1998_v13 = vpop.eup %1576 }
 0x30d   :  { %v2002_v3 = vpop.eup %1578  ;;  %v817_v5 = vsel %vm354_vm2, %v1998_v13, 0.0 }
 0x30e   :  { %v820_v4 = vsel %vm354_vm2, %v2002_v3, 0.0  ;;  %v2008_v6 = vpop.eup %1580 }
 0x30f   :  { %v823_v7 = vsel %vm354_vm2, %v2008_v6, 0.0 }
 0x323   :  { %v804_v2 = vpop.xlane.xlu1 %803 }
 0x324   :  { %1582 = vrcp.f32 %v804_v2 }
 0x327   :  { %815 = vadd.xlane.f32.xlu1 %v814_v63 }
 0x32b   :  { %821 = vadd.xlane.f32.xlu1 %v820_v4  ;;  %818 = vadd.xlane.f32.xlu0 %v817_v5 }
 0x32f   :  { %824 = vadd.xlane.f32.xlu1 %v823_v7 }
 0x331   :  { %v1583_v8 = vpop.eup %1582 }
 0x332   :  { %v827_v10 = vmul.f32 %v1583_v8, %v1971_v29  ;;  %v1262_v8 = vld [vmem:[#allocation12 + $0x10] sm:$0xff] }
 0x334   :  { %v842_v11 = vpack.c.bf16 %v827_v10, %v827_v10 }
 0x336   :  { %1482 = vmatmul.mubr.msk.bf16.vlgmr.msra.gmra.mxu1 %vm354_vm2, %v842_v11  ;;  %v1265_v11 = vpack.c.bf16 %v1263_v9, %v1262_v8 }
 0x337   :  { %1492 = vmatpush3.bf16.msra.mxu1 %v955_v12  ;;  %1493 = vmatprep.mubr.msk.bf16.mxu1 %vm1745_vm0, %v1744_v0 }
 0x338   :  { %1503 = vmatprep.subr.bf16.mxu1 %v1744_v0 }
 0x340   :  { %335 = vrot.lane.b32.xlu1 %v1877_v49, %s1747_s12 }
 0x341   :  { %332 = vrot.lane.b32.xlu0 %v1877_v49, %s1748_s14 }
 0x377   :  { %v807_v14 = vpop.xlane.xlu0 %806 }
 0x378   :  { %1584 = vrcp.f32 %v807_v14  ;;  %v1260_v14 = vld [vmem:[#allocation12] sm:$0xff] }
 0x37b   :  { %v810_v15 = vpop.xlane.xlu1 %809 }
 0x37c   :  { %1586 = vrcp.f32 %v810_v15  ;;  %v1261_v15 = vld [vmem:[#allocation12 + $0x8] sm:$0xff] }
 0x37f   :  { %v813_v16 = vpop.xlane.xlu0 %812  ;;  %v330_v26 = vpop.permute.xlu1 %329 }
 0x380   :  { %1588 = vrcp.f32 %v813_v16  ;;  %v855_v29 = vpack.c.bf16 %v330_v26, %v330_v26 }
 0x382   :  { %v1093_v33 = vsel %vm861_vm3, %v855_v29, 0 }
 0x383   :  { %v326_v17 = vpop.permute.xlu0 %325 }
 0x384   :  { %v853_v19 = vpack.c.bf16 %v326_v17, %v326_v17  ;;  %v1264_v17 = vpack.c.bf16 %v1261_v15, %v1260_v14 }
 0x385   :  { %v1585_v18 = vpop.eup %1584 }
 0x386   :  { %v829_v20 = vmul.f32 %v1585_v18, %v1976_v41  ;;  %v1001_v23 = vsel %vm861_vm3, %v853_v19, 0 }
 0x388   :  { %v843_v21 = vpack.c.bf16 %v829_v20, %v829_v20 }
 0x389   :  { %v1587_v22 = vpop.eup %1586 }
 0x38a   :  { %1488 = vmatmul.mubr.msk.bf16.vlgmr.msra.gmra.mxu0 %vm354_vm2, %v843_v21  ;;  %v831_v24 = vmul.f32 %v1587_v22, %v1980_v44 }
 0x38b   :  { %1498 = vmatpush3.bf16.msra.mxu0 %v1001_v23  ;;  %1499 = vmatprep.mubr.msk.bf16.mxu0 %vm1745_vm0, %v1744_v0 }
 0x38c   :  { %v844_v27 = vpack.c.bf16 %v831_v24, %v831_v24  ;;  %1509 = vmatprep.subr.bf16.mxu0 %v1744_v0 }
 0x38d   :  { %v1589_v28 = vpop.eup %1588 }
 0x38e   :  { %1494 = vmatmul.mubr.msk.bf16.vlgmr.msra.gmra.mxu1 %vm354_vm2, %v844_v27  ;;  %v833_v31 = vmul.f32 %v1589_v28, %v1984_v46 }
 0x38f   :  { %1504 = vmatpush3.bf16.msra.mxu1 %v1047_v30  ;;  %1505 = vmatprep.mubr.msk.bf16.mxu1 %vm1745_vm0, %v1744_v0 }
 0x390   :  { %v845_v49 = vpack.c.bf16 %v833_v31, %v833_v31  ;;  %1515 = vmatprep.subr.bf16.mxu1 %v1744_v0 }
 0x392   :  { %1500 = vmatmul.mubr.msk.bf16.vlgmr.msra.gmra.mxu0 %vm354_vm2, %v845_v49 }
 0x393   :  { %1510 = vmatpush3.bf16.msra.mxu0 %v1093_v33  ;;  %1511 = vmatprep.mubr.msk.bf16.mxu0 %vm1745_vm0, %v1744_v0 }
 0x394   :  { %1521 = vmatprep.subr.bf16.mxu0 %v1744_v0 }
 0x3b0   :  { %v816_v34 = vpop.xlane.xlu1 %815 }
 0x3b1   :  { %1590 = vrcp.f32 %v816_v34 }
 0x3b4   :  { %v822_v35 = vpop.xlane.xlu1 %821  ;;  %v819_v36 = vpop.xlane.xlu0 %818 }
 0x3b5   :  { %1592 = vrcp.f32 %v822_v35 }
 0x3b6   :  { %1594 = vrcp.f32 %v819_v36 }
 0x3b8   :  { %v825_v37 = vpop.xlane.xlu1 %824  ;;  %v333_v38 = vpop.permute.xlu0 %332 }
 0x3b9   :  { %1596 = vrcp.f32 %v825_v37  ;;  %v856_v32 = vpack.c.bf16 %v333_v38, %v333_v38 }
 0x3bb   :  { %v1139_v45 = vsel %vm861_vm3, %v856_v32, 0 }
 0x3bc   :  { %v336_v42 = vpop.permute.xlu1 %335 }
 0x3bd   :  { %v857_v46 = vpack.c.bf16 %v336_v42, %v336_v42 }
 0x3be   :  { %v1591_v40 = vpop.eup %1590 }
 0x3bf   :  { %v835_v41 = vmul.f32 %v1591_v40, %v1996_v1  ;;  %v1185_v52 = vsel %vm861_vm3, %v857_v46, 0 }
 0x3c1   :  { %v846_v43 = vpack.c.bf16 %v835_v41, %v835_v41 }
 0x3c2   :  { %v1593_v44 = vpop.eup %1592 }
 0x3c3   :  { %v1595_v39 = vpop.eup %1594  ;;  %1506 = vmatmul.mubr.msk.bf16.vlgmr.msra.gmra.mxu1 %vm354_vm2, %v846_v43  ;;  %v839_v48 = vmul.f32 %v1593_v44, %v2002_v3 }
 0x3c4   :  { %1516 = vmatpush3.bf16.msra.mxu1 %v1139_v45  ;;  %v837_v47 = vmul.f32 %v1595_v39, %v1998_v13  ;;  %1517 = vmatprep.mubr.msk.bf16.mxu1 %vm1745_vm0, %v1744_v0 }
 0x3c5   :  { %1527 = vmatprep.subr.bf16.mxu1 %v1744_v0  ;;  %v848_v53 = vpack.c.bf16 %v839_v48, %v839_v48  ;;  %v1361_v48 = vld [vmem:[%s2082_s7] ss:$0 sm:$0xff] }
 0x3c6   :  { %v847_v50 = vpack.c.bf16 %v837_v47, %v837_v47  ;;  %v1597_v51 = vpop.eup %1596 }
 0x3c7   :  { %v841_v54 = vmul.f32 %v1597_v51, %v2008_v6 }
 0x3c8   :  { %1512 = vmatmul.mubr.msk.bf16.vlgmr.msra.gmra.mxu0 %vm354_vm2, %v847_v50 }
 0x3c9   :  { %1522 = vmatpush3.bf16.msra.mxu0 %v1185_v52  ;;  %1523 = vmatprep.mubr.msk.bf16.mxu0 %vm1745_vm0, %v1744_v0  ;;  %v849_v55 = vpack.c.bf16 %v841_v54, %v841_v54 }
 0x3cb   :  { %1518 = vmatmul.mubr.msk.bf16.vlgmr.msra.gmra.mxu1 %vm354_vm2, %v848_v53 }
 0x3cc   :  { %1531 = vmatprep.mubr.msk.bf16.mxu1 %vm1745_vm0, %v1744_v0  ;;  %1528 = vmatpush3.bf16.msra.mxu1 %v1265_v11 }
 0x3cd   :  { %1529 = vmatprep.subr.bf16.mxu1 %v1744_v0 }
 0x3d0   :  { %1524 = vmatmul.mubr.msk.bf16.vlgmr.msra.gmra.mxu0 %vm354_vm2, %v849_v55  ;;  %1530 = vmatpush3.bf16.msra.mxu1 %v1264_v17 }
 0x3f6   :  { %v899_v56 = vpop.f32.mrf.mxu1 }
 0x3f8   :  { %v1483_v57 = vpop.f32.mrf.mxu1 }
 0x3fa   :  { %v902_v58 = vpop.f32.mrf.mxu1 }
 0x3fc   :  { %v1484_v59 = vpop.f32.mrf.mxu1 }
 0x44a   :  { %v945_v60 = vpop.f32.mrf.mxu0 }
 0x44c   :  { %v1489_v61 = vpop.f32.mrf.mxu0 }
 0x44e   :  { %v948_v62 = vpop.f32.mrf.mxu0  ;;  %v991_v1 = vpop.f32.mrf.mxu1 }
 0x450   :  { %v1490_v2 = vpop.f32.mrf.mxu0  ;;  %v1495_v13 = vpop.f32.mrf.mxu1 }
 0x452   :  { %v994_v63 = vpop.f32.mrf.mxu1  ;;  %v1037_v3 = vpop.f32.mrf.mxu0 }
 0x454   :  { %v1496_v4 = vpop.f32.mrf.mxu1  ;;  %v1501_v5 = vpop.f32.mrf.mxu0 }
 0x456   :  { %v1040_v6 = vpop.f32.mrf.mxu0 }
 0x458   :  { %v1502_v7 = vpop.f32.mrf.mxu0 }
 0x483   :  { %v1083_v10 = vpop.f32.mrf.mxu1 }
 0x485   :  { %v1507_v12 = vpop.f32.mrf.mxu1 }
 0x487   :  { %v1086_v16 = vpop.f32.mrf.mxu1 }
 0x488   :  { %v1129_v18 = vpop.f32.mrf.mxu0 }
 0x489   :  { %v1551_v19 = vpack.i.bf16 %v1129_v18, %v945_v60  ;;  %v1508_v20 = vpop.f32.mrf.mxu1 }
 0x48a   :  { %v1513_v21 = vpop.f32.mrf.mxu0 }
 0x48b   :  { %1552 = vrot.lane.b32.xlu0 %v1551_v19, %s1740_s13  ;;  %v1175_v22 = vpop.f32.mrf.mxu1 }
 0x48c   :  { %v1132_v23 = vpop.f32.mrf.mxu0  ;;  %v1556_v24 = vpack.i.bf16 %v1175_v22, %v991_v1 }
 0x48d   :  { %v1519_v25 = vpop.f32.mrf.mxu1 }
 0x48e   :  { %v1514_v26 = vpop.f32.mrf.mxu0  ;;  %1557 = vrot.lane.b32.xlu1 %v1556_v24, %s1749_s18 }
 0x48f   :  { %v1178_v27 = vpop.f32.mrf.mxu1 }
 0x490   :  { %v1221_v0 = vpop.f32.mrf.mxu0 }
 0x491   :  { %v1561_v28 = vpack.i.bf16 %v1221_v0, %v1037_v3  ;;  %v1520_v29 = vpop.f32.mrf.mxu1 }
 0x492   :  { %v1525_v30 = vpop.f32.mrf.mxu0 }
 0x493   :  { %1562 = vrot.lane.b32.xlu0 %v1561_v28, %s1750_s19 }
 0x494   :  { %v1224_v31 = vpop.f32.mrf.mxu0 }
 0x496   :  { %v1526_v49 = vpop.f32.mrf.mxu0 }
 0x4fd   :  { %v1553_v33 = vpop.permute.xlu0 %1552 }
 0x4fe   :  { %v1555_v35 = vunpack.i.h.bf16 %v1553_v33  ;;  %v1554_v36 = vunpack.i.l.bf16 %v1553_v33 }
 0x500   :  { %v1558_v34 = vpop.permute.xlu1 %1557  ;;  %v1256_v32 = vsel %vm354_vm2, %v1083_v10, %v1555_v35  ;;  %v1239_v41 = vsel %vm354_vm2, %v899_v56, %v1554_v36 }
 0x501   :  { %v1560_v37 = vunpack.i.h.bf16 %v1558_v34  ;;  %v1559_v38 = vunpack.i.l.bf16 %v1558_v34 }
 0x503   :  { %v1241_v44 = vsel %vm1240_vm9, %v1239_v41, %v1559_v38  ;;  %v1257_v39 = vsel %vm1240_vm9, %v1256_v32, %v1560_v37 }
 0x505   :  { %v1563_v40 = vpop.permute.xlu0 %1562 }
 0x506   :  { %v1565_v42 = vunpack.i.h.bf16 %v1563_v40  ;;  %v1564_v43 = vunpack.i.l.bf16 %v1563_v40 }
 0x508   :  { %v1258_v45 = vsel %vm1242_vm10, %v1257_v39, %v1565_v42  ;;  %v1243_v46 = vsel %vm1242_vm10, %v1241_v44, %v1564_v43 }
 0x509   :  { %v1259_v47 = vpack.c.bf16 %v1258_v45, %v1243_v46 }
 0x50b   :  { %1532 = vmatmul.mubr.msk.bf16.vlgmr.msra.gmra.mxu1 %vm115_vm1, %v1259_v47 }
 0x5cb   :  { %v1310_v50 = vpop.f32.mrf.mxu1 }
 0x5cc   :  { %v1311_v51 = vadd.f32 %v1361_v48, %v1310_v50 }
 0x5cd   :  { %v1533_v52 = vpop.f32.mrf.mxu1 }
 0x5ce   :  { %1317 = vst.msk [vmem:[#allocation13] sm:$0xff] %vm115_vm1, %v1311_v51 }
 0x5cf   :  { %v1313_v53 = vpop.f32.mrf.mxu1 }
 0x5d0   :  { %v1314_v54 = vadd.f32 %v1361_v48, %v1313_v53 }
 0x5d1   :  { %v1534_v55 = vpop.f32.mrf.mxu1 }
 0x5d2   :  { %1318 = vst.msk [vmem:[#allocation13 + $0x8] sm:$0xff] %vm115_vm1, %v1314_v54 }
 0x5d3   :  { %1717 = shalt.err (!%p1714_p1)
}
 0x5d4   :  { %1330 = dma.vmem_to_hbm [thread:$0]  %s1325_s2, 256, %s2083_s8, [#allocation6], %s1739_s0, %s1739_s0, %s1740_s13  }
 0x5d5   :  { %1734 = dma.done.wait [#allocation6], 256  }
 0x5d6   :  { %1735 = vsyncadd [#allocation6], 4294967040 }
 0x5d7   :  { %1334 = vsyncpa [#allocation5], 1 }
 0x5d8   :  { %1335 = vsyncpa [#allocation8], 1 }
 0x5d9   :  { %1336 = vsyncpa [#allocation11], 1 }
 0x5da   :  { %1337 = vsyncpa [#allocation6], 1 }

</bundles_post_ra>
